<compile_context>
chip_gen: v7x
topology: tpu7x:2x2x1
jax: 0.10.0
libtpu: 0.0.40
codegen_flags: <defaults>
</compile_context>

<pallas_src>
import functools

import jax
import jax.numpy as jnp
import numpy as np
from jax import lax
from jax.experimental import pallas as pl
from jax.experimental.pallas import tpu as pltpu

_POS_THR = 0.6
_NEG_THR = 0.4

# Keep target fully VMEM-resident (single DMA) when it is at most this big.
_TARGET_RESIDENT_BYTES = 4 * 1024 * 1024


def _round_up(x, m):
    return ((x + m - 1) // m) * m


def _contrastive_loss_kernel(y_ref, t_ref, out_ref, acc_ref, cs_ref, *,
                             inv_n, tk, n_k, slice_target, mxu_dtype):
    """One (D-tile j, N-tile k) grid step.

    y_ref  : (tk, td)     f32  slice of y_pred
    t_ref  : (n_res, C)   f32  target in natural (N, C) layout
                               (fully resident, or the current (tk, C) tile)
    out_ref: (C, td)      f32  output tile, written on the last N step
    acc_ref: (C, td)      f32  MXU-partial accumulator (persists over k)
    cs_ref : (1, td)      f32  colsum(neg) accumulator  (persists over k)
    """
    k = pl.program_id(1)

    y = y_ref[...]                                    # (tk, td)
    if slice_target:
        row0 = pl.multiple_of(k * tk, 8)              # 8-aligned sublane slice
        t = t_ref[pl.ds(row0, tk), :]                 # (tk, C)
    else:
        t = t_ref[...]                                # (tk, C)

    pos = jnp.maximum(_POS_THR - y, 0.0)              # relu(pos_thr - y)
    neg = jnp.maximum(y - _NEG_THR, 0.0)              # relu(y - neg_thr)
    diff = pos - neg

    if mxu_dtype is not None:                         # optional bf16 MXU feed
        t = t.astype(mxu_dtype)
        diff = diff.astype(mxu_dtype)
        dot_kwargs = {}
    else:
        dot_kwargs = dict(precision=lax.Precision.HIGHEST)

    # target.T @ pos + (1-target).T @ neg  ==  t.T @ (pos-neg) + colsum(neg)
    contrib = lax.dot_general(t, diff, (((0,), (0,)), ((), ())),
                              preferred_element_type=jnp.float32,
                              **dot_kwargs)           # (C, td)
    colsum = jnp.sum(neg, axis=0, keepdims=True)      # (1, td)

    if n_k == 1:                                      # single reduction step
        out_ref[...] = ((contrib + colsum) * inv_n).astype(out_ref.dtype)
        return

    @pl.when(k == 0)
    def _first():                                     # no zero-init round trip
        acc_ref[...] = contrib
        cs_ref[...] = colsum

    @pl.when(jnp.logical_and(k > 0, k < n_k - 1))
    def _middle():
        acc_ref[...] += contrib
        cs_ref[...] += colsum

    @pl.when(k == n_k - 1)
    def _last():                                      # fold last step directly
        out_ref[...] = ((acc_ref[...] + contrib + cs_ref[...] + colsum)
                        * inv_n).astype(out_ref.dtype)


def contrastive_loss(y_pred, target, *, mxu_dtype=None):
    """y_pred: (N, D) float, target: (N, C) float  ->  (C, D) float32."""
    n, d = y_pred.shape
    n2, c = target.shape
    assert n == n2, "y_pred and target must share the batch dimension"

    # ---- N (reduction) tiling: minimal over-padding ------------------------
    if n <= 512:
        n_k, tk, n_pad = 1, n, n                      # single full tile
    else:
        n_k = -(-n // 512)                            # cdiv(n, 512) steps
        tk = _round_up(-(-n // n_k), 8)               # near-even, 8-aligned
        n_pad = tk * n_k

    # ---- D (parallel) tiling: unpadded when possible, >=2 tiles for v7x ----
    if d % 128 == 0:
        d_pad = d
    elif d <= 512:
        d_pad = d                                     # full-dim lane block
    else:
        d_pad = _round_up(d, 128)

    if d_pad % 128 != 0:
        td = d_pad                                    # single full-width tile
    else:
        td = None
        for cand in (512, 256, 128):                  # prefer >= 2 D tiles
            if d_pad % cand == 0 and d_pad // cand >= 2:
                td = cand
                break
        if td is None:                                # only when d_pad == 128
            td = 128

    # ---- pad / cast only when strictly necessary ----------------------------
    y_p = y_pred if y_pred.dtype == jnp.float32 else y_pred.astype(jnp.float32)
    if n_pad != n or d_pad != d:
        y_p = jnp.pad(y_p, ((0, n_pad - n), (0, d_pad - d)))

    t_p = target if target.dtype == jnp.float32 else target.astype(jnp.float32)
    if n_pad != n:
        t_p = jnp.pad(t_p, ((0, n_pad - n), (0, 0)))
    # Zero-padded rows are exact no-ops: zero target rows and relu(0-0.4)=0.
    # Padded D columns are nonzero in contrib but sliced off at the end.

    resident_t = (n_k == 1) or (c * n_pad * 4 <= _TARGET_RESIDENT_BYTES)
    slice_target = resident_t and n_k > 1

    grid = (d_pad // td, n_k)                         # (parallel D, reduce N)

    y_spec_kwargs = {}
    if n_k >= 3:
        # Deeper pipelining of the only streamed operand hides per-step
        # DMA-issue latency when the reduction has many short steps.
        y_spec_kwargs = dict(pipeline_mode=pl.Buffered(3))
    y_spec = pl.BlockSpec((tk, td), lambda j, k: (k, j), **y_spec_kwargs)

    if resident_t:
        # Constant index_map -> target is DMA'd to VMEM once, not per step.
        t_spec = pl.BlockSpec((n_pad, c), lambda j, k: (0, 0))
    else:
        t_spec = pl.BlockSpec((tk, c), lambda j, k: (k, 0))

    kernel = functools.partial(
        _contrastive_loss_kernel,
        inv_n=1.0 / float(n), tk=tk, n_k=n_k,
        slice_target=slice_target, mxu_dtype=mxu_dtype)

    cost = pl.CostEstimate(
        flops=2 * n * c * d + 4 * n * d,
        transcendentals=0,
        bytes_accessed=4 * (n * d + n * c + c * d))

    out_pad = pl.pallas_call(
        kernel,
        out_shape=jax.ShapeDtypeStruct((c, d_pad), jnp.float32),
        grid_spec=pltpu.PrefetchScalarGridSpec(
            num_scalar_prefetch=0,
            grid=grid,
            in_specs=[y_spec, t_spec],
            out_specs=pl.BlockSpec((c, td), lambda j, k: (0, j)),
            scratch_shapes=[pltpu.VMEM((c, td), jnp.float32),
                            pltpu.VMEM((1, td), jnp.float32)],
        ),
        compiler_params=pltpu.CompilerParams(
            dimension_semantics=("parallel", "arbitrary")),
        cost_estimate=cost,
    )(y_p, t_p)

    return out_pad if d_pad == d else out_pad[:, :d]


def _reference(y_pred, target):
    """float64 numpy reference of the PyTorch forward."""
    y = np.asarray(y_pred, dtype=np.float64)
    t = np.asarray(target, dtype=np.float64)
    pos = np.maximum(_POS_THR - y, 0.0)
    neg = np.maximum(y - _NEG_THR, 0.0)
    return (t.T @ pos + (1.0 - t).T @ neg) / t.shape[0]


if __name__ == "__main__":
    key = jax.random.PRNGKey(0)
    k1, k2, k3, k4 = jax.random.split(key, 4)

    # --- small demo consistent with the module: batch=8, hidden=32, classes=16
    N, D, C = 8, 32, 16
    y_pred = jax.random.uniform(k1, (N, D), dtype=jnp.float32)            # preds in [0, 1)
    target = (jax.random.uniform(k2, (N, C)) > 0.5).astype(jnp.float32)   # binary targets

    out = jax.block_until_ready(contrastive_loss(y_pred, target))
    ref = _reference(y_pred, target)
    assert out.shape == (C, D)
    assert np.allclose(np.asarray(out), ref, atol=1e-4, rtol=1e-4), "mismatch (small)"

    # --- larger check: exercises the multi-step N reduction, resident-target
    #     in-kernel slicing, D tiling (2 parallel tiles) and Buffered(3) path.
    N2, D2, C2 = 2080, 256, 10
    y2 = jax.random.uniform(k3, (N2, D2), dtype=jnp.float32)
    t2 = (jax.random.uniform(k4, (N2, C2)) > 0.5).astype(jnp.float32)

    out2 = jax.block_until_ready(contrastive_loss(y2, t2))
    ref2 = _reference(y2, t2)
    assert out2.shape == (C2, D2)
    assert np.allclose(np.asarray(out2), ref2, atol=1e-3, rtol=1e-4), "mismatch (large)"

    print("KERNEL_OK")
</pallas_src>

<mosaic_0001>
module attributes {stable_mosaic.version = 11 : i64} {
  func.func @_contrastive_loss_kernel(%arg0: i32, %arg1: i32, %arg2: memref<8x32xf32, #tpu.memory_space<vmem>>, %arg3: memref<8x16xf32, #tpu.memory_space<vmem>>, %arg4: memref<16x32xf32, #tpu.memory_space<vmem>>, %arg5: memref<16x32xf32, #tpu.memory_space<vmem>>, %arg6: memref<1x32xf32, #tpu.memory_space<vmem>>) attributes {dimension_semantics = [#tpu.dimension_semantics<parallel>, #tpu.dimension_semantics<arbitrary>], iteration_bounds = array<i64: 1, 1>, scalar_prefetch = 0 : i64, scratch_operands = 2 : i64, tpu.core_type = #tpu.core_type<tc>, window_params = [{transform_indices = @transform_0, window_bounds = array<i64: 8, 32>}, {pipeline_mode = #tpu.pipeline_mode<synchronous>, transform_indices = @transform_1, window_bounds = array<i64: 8, 16>}, {transform_indices = @transform_2, window_bounds = array<i64: 16, 32>}]} {
    %c0 = arith.constant 0 : index
    %c0_0 = arith.constant 0 : index
    %0 = vector.load %arg2[%c0, %c0_0] : memref<8x32xf32, #tpu.memory_space<vmem>>, vector<8x32xf32>
    %c0_1 = arith.constant 0 : index
    %c0_2 = arith.constant 0 : index
    %1 = vector.load %arg3[%c0_1, %c0_2] : memref<8x16xf32, #tpu.memory_space<vmem>>, vector<8x16xf32>
    %cst = arith.constant 6.000000e-01 : f32
    %2 = vector.broadcast %cst : f32 to vector<8x32xf32>
    %3 = arith.subf %2, %0 : vector<8x32xf32>
    %cst_3 = arith.constant 0.000000e+00 : f32
    %4 = vector.broadcast %cst_3 : f32 to vector<8x32xf32>
    %5 = arith.maximumf %3, %4 : vector<8x32xf32>
    %cst_4 = arith.constant 4.000000e-01 : f32
    %6 = vector.broadcast %cst_4 : f32 to vector<8x32xf32>
    %7 = arith.subf %0, %6 : vector<8x32xf32>
    %cst_5 = arith.constant 0.000000e+00 : f32
    %8 = vector.broadcast %cst_5 : f32 to vector<8x32xf32>
    %9 = arith.maximumf %7, %8 : vector<8x32xf32>
    %10 = arith.subf %5, %9 : vector<8x32xf32>
    %cst_6 = arith.constant dense<0.000000e+00> : vector<16x32xf32>
    %11 = tpu.matmul %1, %10, %cst_6 {dimension_numbers = #tpu.dot_dimension_numbers<[0], [0], [1], [1], [0, 1, 1, 1], [], []>, precision = #tpu.contract_precision<fp32>} : vector<8x16xf32>, vector<8x32xf32>, vector<16x32xf32> -> vector<16x32xf32>
    %cst_7 = arith.constant dense<0.000000e+00> : vector<32xf32>
    %12 = vector.multi_reduction <add>, %9, %cst_7 [0] : vector<8x32xf32> to vector<32xf32>
    %13 = vector.shape_cast %12 : vector<32xf32> to vector<1x32xf32>
    %14 = vector.broadcast %13 : vector<1x32xf32> to vector<16x32xf32>
    %15 = arith.addf %11, %14 : vector<16x32xf32>
    %cst_8 = arith.constant 1.250000e-01 : f32
    %16 = vector.broadcast %cst_8 : f32 to vector<16x32xf32>
    %17 = arith.mulf %15, %16 : vector<16x32xf32>
    %c0_9 = arith.constant 0 : index
    %c0_10 = arith.constant 0 : index
    %18 = vector.load %arg4[%c0_9, %c0_10] : memref<16x32xf32, #tpu.memory_space<vmem>>, vector<16x32xf32>
    tpu.vector_store %arg4[%c0_9, %c0_10], %17 {strides = array<i32>} : memref<16x32xf32, #tpu.memory_space<vmem>>, vector<16x32xf32>,
    return
  }
  func.func @transform_0(%arg0: i32, %arg1: i32) -> (i32, i32) {
    %c0_i32 = arith.constant 0 : i32
    return %arg1, %arg0 : i32, i32
  }
  func.func @transform_1(%arg0: i32, %arg1: i32) -> (i32, i32) {
    %c0_i32 = arith.constant 0 : i32
    %c0_i32_0 = arith.constant 0 : i32
    %c0_i32_1 = arith.constant 0 : i32
    return %c0_i32, %c0_i32_0 : i32, i32
  }
  func.func @transform_2(%arg0: i32, %arg1: i32) -> (i32, i32) {
    %c0_i32 = arith.constant 0 : i32
    %c0_i32_0 = arith.constant 0 : i32
    return %c0_i32, %arg0 : i32, i32
  }
}

</mosaic_0001>

<bundles_post_ra>
// kernel: tpu_custom_call.1
= control target key start
LH: loop header
LB: loop body
LE: loop exit
PB: predicated region body
PF: predicated region fallthrough
CT: control target
= control target key end

     0   :  { %7 = vsyncpa [#allocation5], 0  ;;  %s799_s0 = inlined_call_operand.hbm [shape: f32[8,32], index: 0, kind: input, shape index: {}]   ;;  %s800_s1 = inlined_call_operand.hbm [shape: f32[8,16], index: 1, kind: input, shape index: {}]   ;;  %s801_s2 = inlined_call_operand.hbm [shape: f32[16,32], index: 2, kind: output, shape index: {}]  }
   0x1   :  { %8 = vsyncpa [#allocation8], 0 }
   0x2   :  { %9 = vsyncpa [#allocation6], 0  ;;  %s740_s9 = smov [#allocation4]   ;;  %s741_s11 = smov [#allocation7]  }
   0x3   :  { %s16_s10 = sshll.u32 %s740_s9, 4  ;;  %s26_s12 = sshll.u32 %s741_s11, 4  ;;  %s17_s10 = int_to_ptr.vmem [resolvable:$true] %s16_s10  ;;  %s27_s12 = int_to_ptr.vmem [resolvable:$true] %s26_s12 }
   0x4   :  { %s668_s15 = scalar_lea.hbm %s799_s0, 128 }
   0x5   :  { %p669_p0 = scmp.ne.s32.totalorder %s799_s0, %s668_s15  ;;  %p672_p1 = scmp.lt.u32.totalorder %s668_s15, %s799_s0 }
   0x7   :  { %p674_p2 = pnand %p672_p1, %p669_p0 }
   0x9   :  { %677 = shalt.err (!%p674_p2)
}
   0xa   :  { %s678_s20 = scalar_lea.vmem %s17_s10, 128  ;;  %p683_p4 = scmp.lt.s32.totalorder %s17_s10, %s17_s10 }
   0xb   :  { %p679_p3 = scmp.ne.s32.totalorder %s17_s10, %s678_s20  ;;  %p684_p5 = scmp.lt.s32.totalorder %s678_s20, %s678_s20 }
   0xd   :  { %p685_p6 = por %p684_p5, %p683_p4 }
   0xf   :  { %p686_p7 = pnand %p685_p6, %p679_p3 }
  0x11   :  { %689 = shalt.err (!%p686_p7)
}
  0x12   :  { %19 = dma.hbm_to_vmem [thread:$0]  %s799_s0, 128, %s17_s10, [#allocation5]  }
  0x13   :  { %s690_s25 = scalar_lea.hbm %s800_s1, 128 }
  0x14   :  { %p691_p8 = scmp.ne.s32.totalorder %s800_s1, %s690_s25  ;;  %p694_p9 = scmp.lt.u32.totalorder %s690_s25, %s800_s1 }
  0x16   :  { %p696_p10 = pnand %p694_p9, %p691_p8 }
  0x18   :  { %699 = shalt.err (!%p696_p10)
}
  0x19   :  { %s700_s30 = scalar_lea.vmem %s27_s12, 128  ;;  %p705_p12 = scmp.lt.s32.totalorder %s27_s12, %s27_s12 }
  0x1a   :  { %p701_p11 = scmp.ne.s32.totalorder %s27_s12, %s700_s30  ;;  %p706_p13 = scmp.lt.s32.totalorder %s700_s30, %s700_s30 }
  0x1c   :  { %p707_p0 = por %p706_p13, %p705_p12 }
  0x1e   :  { %p708_p1 = pnand %p707_p0, %p701_p11 }
  0x20   :  { %711 = shalt.err (!%p708_p1)
}
  0x21   :  { %29 = dma.hbm_to_vmem [thread:$0]  %s800_s1, 128, %s27_s12, [#allocation8]  }
  0x22   :  { %734 = dma.done.wait [#allocation5], 128  }
  0x23   :  { %735 = vsyncadd [#allocation5], 4294967168 }
  0x24   :  { %736 = dma.done.wait [#allocation8], 128  }
  0x25   :  { %737 = vsyncadd [#allocation8], 4294967168  ;;  %v37_v0 = vld [vmem:[#allocation7] sm:$0xff]  ;;  %v36_v1 = vld [vmem:[#allocation4] sm:$0xff]  ;;  %vm83_vm0 = vcmask 64512   ;;  %vm43_vm1 = vcmask 261120  }
  0x26   :  { %51 = vxpose.xlu0.b32.start.end [1/1] (short) (narrow) %v37_v0, 16  ;;  %v38_v2 = vsub.f32 0.6, %v36_v1  ;;  %v601_v3 = vadd.f32 -0.4, %v36_v1  ;;  %s742_s1 = smov [#allocation9]  }
  0x27   :  { %s588_s4 = sshll.u32 %s742_s1, 4  ;;  %s589_s4 = int_to_ptr.vmem [resolvable:$true] %s588_s4 }
  0x28   :  { %v39_v4 = vmax.f32 %v38_v2, 0.0  ;;  %v41_v5 = vmax.f32 %v601_v3, 0.0  ;;  %s712_s5 = scalar_lea.vmem %s589_s4, 256  ;;  %p717_p3 = scmp.lt.s32.totalorder %s589_s4, %s589_s4 }
  0x29   :  { %p713_p2 = scmp.ne.s32.totalorder %s589_s4, %s712_s5  ;;  %p718_p4 = scmp.lt.s32.totalorder %s712_s5, %s712_s5 }
  0x2a   :  { %v42_v6 = vsub.f32 %v39_v4, %v41_v5  ;;  %v44_v26 = vsel %vm43_vm1, %v41_v5, 0.0 }
  0x2b   :  { %v45_v27 = vrot.slane %v44_v26, 4  ;;  %p719_p5 = por %p718_p4, %p717_p3 }
  0x2c   :  { %v91_v7 = vand.u32 4294901760, %v42_v6 }
  0x2d   :  { %v46_v28 = vadd.f32 %v45_v27, %v44_v26  ;;  %p720_p6 = pnand %p719_p5, %p713_p2 }
  0x2e   :  { %635 = vmatprep.subr.mxu0 %v91_v7  ;;  %620 = vmatprep.subr.mxu1 %v91_v7  ;;  %v178_v8 = vsub.f32 %v42_v6, %v91_v7 }
  0x2f   :  { %636 = vmatpush3.msra.mxu0 %v91_v7  ;;  %621 = vmatpush3.msra.mxu1 %v91_v7  ;;  %v47_v29 = vrot.slane %v46_v28, 2 }
  0x30   :  { %v179_v9 = vand.u32 4294901760, %v178_v8 }
  0x31   :  { %v48_v30 = vadd.f32 %v47_v29, %v46_v28 }
  0x32   :  { %v180_v10 = vsub.f32 %v178_v8, %v179_v9  ;;  %640 = vmatprep.subr.mxu0 %v179_v9 }
  0x33   :  { %v49_v31 = vrot.slane %v48_v30, 1 }
  0x34   :  { %v181_v11 = vand.u32 4294901760, %v180_v10 }
  0x35   :  { %v50_v34 = vadd.f32 %v49_v31, %v48_v30 }
  0x36   :  { %625 = vmatprep.subr.mxu1 %v181_v11 }
  0xa6   :  { %v67_v12 = vpop.trf.xlu0 }
  0xa7   :  { %v85_v13 = vsel %vm83_vm0, %v67_v12, 0 }
  0xa8   :  { %v156_v14 = vand.u32 4294901760, %v85_v13 }
  0xaa   :  { %v157_v15 = vsub.f32 %v85_v13, %v156_v14  ;;  %v68_v16 = vpop.trf.xlu0 }
  0xab   :  { %v88_v17 = vsel %vm83_vm0, %v68_v16, 0 }
  0xac   :  { %v166_v18 = vand.u32 4294901760, %v88_v17  ;;  %v158_v19 = vand.u32 4294901760, %v157_v15 }
  0xae   :  { %v167_v20 = vsub.f32 %v88_v17, %v166_v18  ;;  %637 = vmatprep.mubr.f32.mxu0 %v158_v19  ;;  %v159_v21 = vsub.f32 %v157_v15, %v158_v19 }
  0xb0   :  { %v160_v22 = vand.u32 4294901760, %v159_v21  ;;  %v168_v23 = vand.u32 4294901760, %v167_v20 }
  0xb2   :  { %622 = vmatprep.mubr.f32.mxu1 %v160_v22  ;;  %638 = vmatmul.mubr.f32.vlgmr.msra.gmra.mrb[0].mxu0 %v168_v23  ;;  %v169_v24 = vsub.f32 %v167_v20, %v168_v23 }
  0xb3   :  { %642 = vmatprep.mubr.f32.mxu0 %v156_v14  ;;  %641 = vmatpush3.msra.mxu0 %v179_v9 }
  0xb4   :  { %v170_v25 = vand.u32 4294901760, %v169_v24  ;;  %645 = vmatprep.subr.mxu0 %v91_v7 }
  0xb6   :  { %623 = vmatmul.mubr.f32.vlgmr.msra.gmra.mrb[0].mxu1 %v170_v25 }
  0xb7   :  { %626 = vmatpush3.msra.mxu1 %v181_v11  ;;  %627 = vmatprep.mubr.f32.mxu1 %v156_v14 }
  0xb8   :  { %630 = vmatprep.subr.mxu1 %v178_v8 }
  0xba   :  { %643 = vmatmul.mubr.f32.vlgmr.msra.gmra.mrb[0].mxu0 %v166_v18 }
  0xbb   :  { %647 = vmatprep.mubr.f32.mxu0 %v156_v14  ;;  %646 = vmatpush3.msra.mxu0 %v91_v7 }
  0xbe   :  { %628 = vmatmul.mubr.f32.vlgmr.msra.gmra.mrb[0].mxu1 %v166_v18 }
  0xbf   :  { %631 = vmatpush3.msra.mxu1 %v178_v8  ;;  %632 = vmatprep.mubr.f32.mxu1 %v157_v15 }
  0xc2   :  { %648 = vmatmul.mubr.f32.vlgmr.msra.gmra.mrb[0].mxu0 %v166_v18 }
  0xc6   :  { %633 = vmatmul.mubr.f32.vlgmr.msra.gmra.mrb[0].mxu1 %v167_v20 }
 0x195   :  { %v649_v32 = vpop.f32.mrb[0].mxu0 }
 0x196   :  { %v569_v33 = vpop.f32.mrb[1].mxu0 }
 0x199   :  { %v634_v35 = vpop.f32.mrb[0].mxu1 }
 0x19a   :  { %v650_v36 = vadd.f32 %v634_v35, %v50_v34  ;;  %v328_v37 = vpop.f32.mrb[1].mxu1 }
 0x19b   :  { %v652_v38 = vadd.f32 %v328_v37, %v50_v34 }
 0x19c   :  { %v651_v39 = vadd.f32 %v650_v36, %v649_v32 }
 0x19d   :  { %v653_v40 = vadd.f32 %v652_v38, %v569_v33 }
 0x19e   :  { %v580_v41 = vmul.f32 0.125, %v651_v39 }
 0x19f   :  { %v579_v42 = vmul.f32 0.125, %v653_v40 }
 0x1a0   :  { %582 = vst.msk [vmem:[#allocation9 + $0x8] sm:$0xff] %vm43_vm1, %v580_v41 }
 0x1a1   :  { %581 = vst.msk [vmem:[#allocation9] sm:$0xff] %vm43_vm1, %v579_v42 }
 0x1a2   :  { %723 = shalt.err (!%p720_p6)
}
 0x1a3   :  { %s724_s8 = scalar_lea.hbm %s801_s2, 256 }
 0x1a4   :  { %p725_p7 = scmp.ne.s32.totalorder %s801_s2, %s724_s8  ;;  %p728_p8 = scmp.lt.u32.totalorder %s724_s8, %s801_s2 }
 0x1a6   :  { %p730_p9 = pnand %p728_p8, %p725_p7 }
 0x1a8   :  { %733 = shalt.err (!%p730_p9)
}
 0x1a9   :  { %s743_s13 = smov 128   ;;  %s744_s14 = smov 8  }
 0x1aa   :  { %594 = dma.vmem_to_hbm [thread:$0]  %s589_s4, 256, %s801_s2, [#allocation6], %s743_s13, %s743_s13, %s744_s14  }
 0x1ab   :  { %738 = dma.done.wait [#allocation6], 256  }
 0x1ac   :  { %739 = vsyncadd [#allocation6], 4294967040 }
 0x1ad   :  { %598 = vsyncpa [#allocation5], 1 }
 0x1ae   :  { %599 = vsyncpa [#allocation8], 1 }
 0x1af   :  { %600 = vsyncpa [#allocation6], 1 }

</bundles_post_ra>
